<compile_context>
chip_gen: v7x
topology: tpu7x:2x2x1
jax: 0.10.0
libtpu: 0.0.40
codegen_flags: <defaults>
</compile_context>

<pallas_src>
import functools

import numpy as np
import jax
import jax.numpy as jnp
from jax.experimental import pallas as pl
from jax.experimental.pallas import tpu as pltpu

LEAKY_SLOPE = 0.01  # PyTorch F.leaky_relu default


def _leaky_relu(x):
    # slope < 1  =>  leaky_relu(x) == max(x, slope * x)  (2 VPU ops)
    return jnp.maximum(x, LEAKY_SLOPE * x)


def anet_kernel(s_dim, s_ref, w123_ref, w4_ref, w5_ref, b_ref, out_ref, x_sc):
    """Entire 5-layer MLP in one kernel: 5 MXU matmuls (bf16 in, f32
    accumulate) + VPU leaky-relu + EUP sigmoid; everything VMEM-resident.

    The s[0,9,0,:] slice and zero-pad now happen here instead of in wrapper
    XLA ops: row 0, lanes [0, s_dim) of the (8,128) scratch hold the state,
    everything else is zero (matches the zero-padded weight rows/cols)."""
    x_sc[...] = jnp.zeros_like(x_sc)
    x_sc[0:1, 0:s_dim] = s_ref[0, 9, 0:1, :]          # masked slice store
    h = x_sc[...]                                     # (8, 128) f32

    # fcs1 / fcs2 / fcs3: three packed 128x128 bf16 weights.
    for i in range(3):
        z = jnp.dot(h.astype(jnp.bfloat16), w123_ref[i],
                    preferred_element_type=jnp.float32) + b_ref[i, :128]
        h = _leaky_relu(z)

    # fcs4: 128 -> 1024
    z = jnp.dot(h.astype(jnp.bfloat16), w4_ref[...],
                preferred_element_type=jnp.float32) + b_ref[3, :]
    h = _leaky_relu(z)

    # fc1: 1024 -> 128 (2*a_dim padded), then sigmoid
    z = jnp.dot(h.astype(jnp.bfloat16), w5_ref[...],
                preferred_element_type=jnp.float32) + b_ref[4, :128]
    out_ref[...] = jax.nn.sigmoid(z)


def _pad2d(w, rows, cols):
    return jnp.zeros((rows, cols), jnp.float32).at[:w.shape[0], :w.shape[1]].set(w)


def init_anet_params(key, s_dim, a_dim):
    """Deterministic parameter init mirroring the shapes in ANet.__init__.

    PyTorch Linear weight is (out, in); we store (in, out).  Biases get a
    small deterministic normal init (exact values irrelevant for a synthetic
    kernel)."""
    dims = [(s_dim, 100), (100, 100), (100, 100), (100, 1000), (1000, 2 * a_dim)]
    means = [0.1, 0.1, 0.1, 0.1, 0.0]
    stds = [0.02, 0.02, 0.02, 0.02, 0.1]
    params = []
    keys = jax.random.split(key, 2 * len(dims))
    for i, (fin, fout) in enumerate(dims):
        w = means[i] + stds[i] * jax.random.normal(keys[2 * i], (fin, fout),
                                                   dtype=jnp.float32)
        b = 0.01 * jax.random.normal(keys[2 * i + 1], (fout,), dtype=jnp.float32)
        params.append((w, b))
    return params


def prepare_params(params):
    """One-time packing/padding/casting of parameters (off the per-call path).

    Returns device-resident arrays consumed directly by the kernel:
      w123 : (3, 128, 128) bf16   -- fcs1, fcs2, fcs3 weights (in, out), padded
      w4   : (128, 1024)   bf16   -- fcs4 weight, padded
      w5   : (1024, 128)   bf16   -- fc1 weight, padded
      b_all: (5, 1024)     f32    -- all biases, zero-padded to 1024 lanes
    """
    w123 = jnp.stack([
        _pad2d(params[0][0], 128, 128),
        _pad2d(params[1][0], 128, 128),
        _pad2d(params[2][0], 128, 128),
    ]).astype(jnp.bfloat16)
    w4 = _pad2d(params[3][0], 128, 1024).astype(jnp.bfloat16)
    w5 = _pad2d(params[4][0], 1024, 128).astype(jnp.bfloat16)
    b_all = jnp.zeros((5, 1024), jnp.float32)
    for i, (_, b) in enumerate(params):
        b_all = b_all.at[i, :b.shape[0]].set(b)
    return (jax.device_put(w123), jax.device_put(w4),
            jax.device_put(w5), jax.device_put(b_all))


# Static cost estimate for the kernel (M=8 row block).
_FLOPS = 2 * 8 * (3 * 128 * 128 + 128 * 1024 + 1024 * 128)
_BYTES = ((3 * 128 * 128 + 128 * 1024 + 1024 * 128) * 2   # bf16 weights
          + 5 * 1024 * 4                                   # biases
          + 8 * 128 * 4                                    # output slab
          + 4096)                                          # ~state tensor
_COST = pl.CostEstimate(flops=_FLOPS, transcendentals=8 * 128,
                        bytes_accessed=_BYTES)


def anet_forward(s, prepared, s_dim, a_dim):
    """s: (B, 10, C, s_dim) float32; forward uses only s[0, 9, 0, :].

    The state slice/pad is done inside the kernel; the only wrapper op left is
    the trailing (2*a_dim,) output slice (kept for exact output semantics)."""
    w123, w4, w5, b_all = prepared
    vmem = pl.BlockSpec(memory_space=pltpu.MemorySpace.VMEM)
    out_p = pl.pallas_call(
        functools.partial(anet_kernel, s_dim),
        out_shape=jax.ShapeDtypeStruct((8, 128), jnp.float32),
        in_specs=[vmem] * 5,
        out_specs=vmem,
        scratch_shapes=[pltpu.VMEM((8, 128), jnp.float32)],
        cost_estimate=_COST,
    )(s, w123, w4, w5, b_all)
    return out_p[0, :2 * a_dim]


def anet_forward_ref(s, params, a_dim):
    """Pure-JAX reference mirroring the PyTorch forward, with the same bf16
    weight quantization / f32 accumulation as the kernel."""
    x = s[0, 9, 0, :]
    for w, b in params[:-1]:
        z = jnp.dot(x.astype(jnp.bfloat16), w.astype(jnp.bfloat16),
                    preferred_element_type=jnp.float32) + b
        x = jnp.where(z > 0, z, LEAKY_SLOPE * z)
    w, b = params[-1]
    z = jnp.dot(x.astype(jnp.bfloat16), w.astype(jnp.bfloat16),
                preferred_element_type=jnp.float32) + b
    return jax.nn.sigmoid(z)


if __name__ == "__main__":
    s_dim = 20
    a_dim = 4

    key = jax.random.PRNGKey(0)
    k_s, k_p = jax.random.split(key)

    # s indexed as s[0][9][0] in the torch forward -> needs >=1 x >=10 x >=1 x s_dim
    s = jax.random.normal(k_s, (2, 10, 3, s_dim), dtype=jnp.float32)
    params = init_anet_params(k_p, s_dim, a_dim)

    prepared = prepare_params(params)      # one-time pad/pack/cast (off hot path)

    fwd = jax.jit(lambda s_, p_: anet_forward(s_, p_, s_dim, a_dim))
    out = fwd(s, prepared)
    out = jax.block_until_ready(out)

    ref = anet_forward_ref(s, params, a_dim)
    assert out.shape == (2 * a_dim,)
    np.testing.assert_allclose(np.asarray(out), np.asarray(ref),
                               rtol=1e-2, atol=1e-2)
    print("KERNEL_OK")
</pallas_src>

<mosaic_0001>
module attributes {stable_mosaic.version = 11 : i64} {
  func.func @anet_kernel(%arg0: memref<2x10x3x20xf32, #tpu.memory_space<vmem>>, %arg1: memref<3x128x128xbf16, #tpu.memory_space<vmem>>, %arg2: memref<128x1024xbf16, #tpu.memory_space<vmem>>, %arg3: memref<1024x128xbf16, #tpu.memory_space<vmem>>, %arg4: memref<5x1024xf32, #tpu.memory_space<vmem>>, %arg5: memref<8x128xf32, #tpu.memory_space<vmem>>, %arg6: memref<8x128xf32, #tpu.memory_space<vmem>>) attributes {dimension_semantics = [], scalar_prefetch = 0 : i64, scratch_operands = 1 : i64, tpu.core_type = #tpu.core_type<tc>} {
    %cst = arith.constant 0.000000e+00 : f32
    %0 = vector.broadcast %cst : f32 to vector<8x128xf32>
    %c0 = arith.constant 0 : index
    %c0_0 = arith.constant 0 : index
    %1 = vector.load %arg6[%c0, %c0_0] : memref<8x128xf32, #tpu.memory_space<vmem>>, vector<8x128xf32>
    tpu.vector_store %arg6[%c0, %c0_0], %0 {strides = array<i32>} : memref<8x128xf32, #tpu.memory_space<vmem>>, vector<8x128xf32>,
    %c0_1 = arith.constant 0 : index
    %c9 = arith.constant 9 : index
    %c0_2 = arith.constant 0 : index
    %c0_3 = arith.constant 0 : index
    %2 = vector.load %arg0[%c0_1, %c9, %c0_2, %c0_3] : memref<2x10x3x20xf32, #tpu.memory_space<vmem>>, vector<1x1x1x20xf32>
    %3 = vector.shape_cast %2 : vector<1x1x1x20xf32> to vector<1x20xf32>
    %c0_4 = arith.constant 0 : index
    %c0_5 = arith.constant 0 : index
    %4 = vector.load %arg6[%c0_4, %c0_5] : memref<8x128xf32, #tpu.memory_space<vmem>>, vector<1x20xf32>
    tpu.vector_store %arg6[%c0_4, %c0_5], %3 {strides = array<i32>} : memref<8x128xf32, #tpu.memory_space<vmem>>, vector<1x20xf32>,
    %c0_6 = arith.constant 0 : index
    %c0_7 = arith.constant 0 : index
    %5 = vector.load %arg6[%c0_6, %c0_7] : memref<8x128xf32, #tpu.memory_space<vmem>>, vector<8x128xf32>
    %6 = arith.truncf %5 : vector<8x128xf32> to vector<8x128xbf16>
    %c0_8 = arith.constant 0 : index
    %c0_9 = arith.constant 0 : index
    %c0_10 = arith.constant 0 : index
    %7 = vector.load %arg1[%c0_8, %c0_9, %c0_10] : memref<3x128x128xbf16, #tpu.memory_space<vmem>>, vector<1x128x128xbf16>
    %8 = vector.shape_cast %7 : vector<1x128x128xbf16> to vector<128x128xbf16>
    %cst_11 = arith.constant dense<0.000000e+00> : vector<8x128xf32>
    %9 = tpu.matmul %6, %8, %cst_11 {dimension_numbers = #tpu.dot_dimension_numbers<[1], [0], [0], [1], [0, 0, 1, 1], [], []>} : vector<8x128xbf16>, vector<128x128xbf16>, vector<8x128xf32> -> vector<8x128xf32>
    %c0_12 = arith.constant 0 : index
    %c0_13 = arith.constant 0 : index
    %10 = vector.load %arg4[%c0_12, %c0_13] : memref<5x1024xf32, #tpu.memory_space<vmem>>, vector<1x128xf32>
    %11 = vector.shape_cast %10 : vector<1x128xf32> to vector<128xf32>
    %12 = vector.shape_cast %11 : vector<128xf32> to vector<1x128xf32>
    %13 = vector.broadcast %12 : vector<1x128xf32> to vector<8x128xf32>
    %14 = arith.addf %9, %13 : vector<8x128xf32>
    %cst_14 = arith.constant 0.00999999977 : f32
    %15 = vector.broadcast %cst_14 : f32 to vector<8x128xf32>
    %16 = arith.mulf %15, %14 : vector<8x128xf32>
    %17 = arith.maximumf %14, %16 : vector<8x128xf32>
    %18 = arith.truncf %17 : vector<8x128xf32> to vector<8x128xbf16>
    %c1 = arith.constant 1 : index
    %c0_15 = arith.constant 0 : index
    %c0_16 = arith.constant 0 : index
    %19 = vector.load %arg1[%c1, %c0_15, %c0_16] : memref<3x128x128xbf16, #tpu.memory_space<vmem>>, vector<1x128x128xbf16>
    %20 = vector.shape_cast %19 : vector<1x128x128xbf16> to vector<128x128xbf16>
    %cst_17 = arith.constant dense<0.000000e+00> : vector<8x128xf32>
    %21 = tpu.matmul %18, %20, %cst_17 {dimension_numbers = #tpu.dot_dimension_numbers<[1], [0], [0], [1], [0, 0, 1, 1], [], []>} : vector<8x128xbf16>, vector<128x128xbf16>, vector<8x128xf32> -> vector<8x128xf32>
    %c1_18 = arith.constant 1 : index
    %c0_19 = arith.constant 0 : index
    %22 = vector.load %arg4[%c1_18, %c0_19] : memref<5x1024xf32, #tpu.memory_space<vmem>>, vector<1x128xf32>
    %23 = vector.shape_cast %22 : vector<1x128xf32> to vector<128xf32>
    %24 = vector.shape_cast %23 : vector<128xf32> to vector<1x128xf32>
    %25 = vector.broadcast %24 : vector<1x128xf32> to vector<8x128xf32>
    %26 = arith.addf %21, %25 : vector<8x128xf32>
    %cst_20 = arith.constant 0.00999999977 : f32
    %27 = vector.broadcast %cst_20 : f32 to vector<8x128xf32>
    %28 = arith.mulf %27, %26 : vector<8x128xf32>
    %29 = arith.maximumf %26, %28 : vector<8x128xf32>
    %30 = arith.truncf %29 : vector<8x128xf32> to vector<8x128xbf16>
    %c2 = arith.constant 2 : index
    %c0_21 = arith.constant 0 : index
    %c0_22 = arith.constant 0 : index
    %31 = vector.load %arg1[%c2, %c0_21, %c0_22] : memref<3x128x128xbf16, #tpu.memory_space<vmem>>, vector<1x128x128xbf16>
    %32 = vector.shape_cast %31 : vector<1x128x128xbf16> to vector<128x128xbf16>
    %cst_23 = arith.constant dense<0.000000e+00> : vector<8x128xf32>
    %33 = tpu.matmul %30, %32, %cst_23 {dimension_numbers = #tpu.dot_dimension_numbers<[1], [0], [0], [1], [0, 0, 1, 1], [], []>} : vector<8x128xbf16>, vector<128x128xbf16>, vector<8x128xf32> -> vector<8x128xf32>
    %c2_24 = arith.constant 2 : index
    %c0_25 = arith.constant 0 : index
    %34 = vector.load %arg4[%c2_24, %c0_25] : memref<5x1024xf32, #tpu.memory_space<vmem>>, vector<1x128xf32>
    %35 = vector.shape_cast %34 : vector<1x128xf32> to vector<128xf32>
    %36 = vector.shape_cast %35 : vector<128xf32> to vector<1x128xf32>
    %37 = vector.broadcast %36 : vector<1x128xf32> to vector<8x128xf32>
    %38 = arith.addf %33, %37 : vector<8x128xf32>
    %cst_26 = arith.constant 0.00999999977 : f32
    %39 = vector.broadcast %cst_26 : f32 to vector<8x128xf32>
    %40 = arith.mulf %39, %38 : vector<8x128xf32>
    %41 = arith.maximumf %38, %40 : vector<8x128xf32>
    %42 = arith.truncf %41 : vector<8x128xf32> to vector<8x128xbf16>
    %c0_27 = arith.constant 0 : index
    %c0_28 = arith.constant 0 : index
    %43 = vector.load %arg2[%c0_27, %c0_28] : memref<128x1024xbf16, #tpu.memory_space<vmem>>, vector<128x1024xbf16>
    %cst_29 = arith.constant dense<0.000000e+00> : vector<8x1024xf32>
    %44 = tpu.matmul %42, %43, %cst_29 {dimension_numbers = #tpu.dot_dimension_numbers<[1], [0], [0], [1], [0, 0, 1, 1], [], []>} : vector<8x128xbf16>, vector<128x1024xbf16>, vector<8x1024xf32> -> vector<8x1024xf32>
    %c3 = arith.constant 3 : index
    %c0_30 = arith.constant 0 : index
    %45 = vector.load %arg4[%c3, %c0_30] : memref<5x1024xf32, #tpu.memory_space<vmem>>, vector<1x1024xf32>
    %46 = vector.shape_cast %45 : vector<1x1024xf32> to vector<1024xf32>
    %47 = vector.shape_cast %46 : vector<1024xf32> to vector<1x1024xf32>
    %48 = vector.broadcast %47 : vector<1x1024xf32> to vector<8x1024xf32>
    %49 = arith.addf %44, %48 : vector<8x1024xf32>
    %cst_31 = arith.constant 0.00999999977 : f32
    %50 = vector.broadcast %cst_31 : f32 to vector<8x1024xf32>
    %51 = arith.mulf %50, %49 : vector<8x1024xf32>
    %52 = arith.maximumf %49, %51 : vector<8x1024xf32>
    %53 = arith.truncf %52 : vector<8x1024xf32> to vector<8x1024xbf16>
    %c0_32 = arith.constant 0 : index
    %c0_33 = arith.constant 0 : index
    %54 = vector.load %arg3[%c0_32, %c0_33] : memref<1024x128xbf16, #tpu.memory_space<vmem>>, vector<1024x128xbf16>
    %cst_34 = arith.constant dense<0.000000e+00> : vector<8x128xf32>
    %55 = tpu.matmul %53, %54, %cst_34 {dimension_numbers = #tpu.dot_dimension_numbers<[1], [0], [0], [1], [0, 0, 1, 1], [], []>} : vector<8x1024xbf16>, vector<1024x128xbf16>, vector<8x128xf32> -> vector<8x128xf32>
    %c4 = arith.constant 4 : index
    %c0_35 = arith.constant 0 : index
    %56 = vector.load %arg4[%c4, %c0_35] : memref<5x1024xf32, #tpu.memory_space<vmem>>, vector<1x128xf32>
    %57 = vector.shape_cast %56 : vector<1x128xf32> to vector<128xf32>
    %58 = vector.shape_cast %57 : vector<128xf32> to vector<1x128xf32>
    %59 = vector.broadcast %58 : vector<1x128xf32> to vector<8x128xf32>
    %60 = arith.addf %55, %59 : vector<8x128xf32>
    %61 = arith.negf %60 : vector<8x128xf32>
    %62 = math.exp %61 : vector<8x128xf32>
    %cst_36 = arith.constant 1.000000e+00 : f32
    %63 = vector.broadcast %cst_36 : f32 to vector<8x128xf32>
    %64 = arith.addf %63, %62 : vector<8x128xf32>
    %65 = arith.divf %63, %64 : vector<8x128xf32>
    %c0_37 = arith.constant 0 : index
    %c0_38 = arith.constant 0 : index
    %66 = vector.load %arg5[%c0_37, %c0_38] : memref<8x128xf32, #tpu.memory_space<vmem>>, vector<8x128xf32>
    tpu.vector_store %arg5[%c0_37, %c0_38], %65 {strides = array<i32>} : memref<8x128xf32, #tpu.memory_space<vmem>>, vector<8x128xf32>,
    return
  }
}

</mosaic_0001>

<bundles_post_ra>
// kernel: _lambda_.1
= control target key start
LH: loop header
LB: loop body
LE: loop exit
PB: predicated region body
PF: predicated region fallthrough
CT: control target
= control target key end

     0   :  { %10 = vsyncpa [#allocation4], 0  ;;  %s2358_s0 = inlined_call_operand.vmem [shape: f32[2,10,3,20], index: 0, kind: input, shape index: {}]   ;;  %s2359_s1 = inlined_call_operand.hbm [shape: bf16[3,128,128], index: 1, kind: input, shape index: {}]   ;;  %s2360_s2 = inlined_call_operand.hbm [shape: bf16[128,1024], index: 2, kind: input, shape index: {}]   ;;  %s2361_s3 = inlined_call_operand.hbm [shape: bf16[1024,128], index: 3, kind: input, shape index: {}]   ;;  %s2362_s4 = inlined_call_operand.vmem [shape: f32[5,1024], index: 4, kind: input, shape index: {}]   ;;  %s2363_s5 = inlined_call_operand.vmem [shape: f32[8,128], index: 5, kind: output, shape index: {}]  }
   0x1   :  { %11 = vsyncpa [#allocation6], 0  ;;  %s2201_s18 = smov [#allocation5]   ;;  %s2131_s22 = scalar_lea.hbm %s2360_s2, 8192 }
   0x2   :  { %s31_s19 = sshll.u32 %s2201_s18, 4  ;;  %p2132_p0 = scmp.ne.s32.totalorder %s2360_s2, %s2131_s22  ;;  %s32_s19 = int_to_ptr.vmem [resolvable:$true] %s31_s19 }
   0x3   :  { %p2135_p1 = scmp.lt.u32.totalorder %s2131_s22, %s2360_s2 }
   0x5   :  { %p2137_p2 = pnand %p2135_p1, %p2132_p0 }
   0x7   :  { %2140 = shalt.err (!%p2137_p2)
}
   0x8   :  { %s2141_s27 = scalar_lea.vmem %s32_s19, 8192  ;;  %p2146_p4 = scmp.lt.s32.totalorder %s32_s19, %s32_s19 }
   0x9   :  { %p2142_p3 = scmp.ne.s32.totalorder %s32_s19, %s2141_s27  ;;  %p2147_p5 = scmp.lt.s32.totalorder %s2141_s27, %s2141_s27 }
   0xb   :  { %p2148_p6 = por %p2147_p5, %p2146_p4 }
   0xd   :  { %p2149_p7 = pnand %p2148_p6, %p2142_p3 }
   0xf   :  { %2152 = shalt.err (!%p2149_p7)
}
  0x10   :  { %s2202_s28 = smov 512   ;;  %s2203_s29 = smov 32  }
  0x11   :  { %37 = dma.hbm_to_vmem [thread:$0]  %s2360_s2, 8192, %s32_s19, [#allocation6], %s2202_s28, %s2202_s28, %s2203_s29  }
  0x12   :  { %s2204_s7 = smov [#allocation3]   ;;  %s2153_s11 = scalar_lea.hbm %s2359_s1, 3072 }
  0x13   :  { %s19_s8 = sshll.u32 %s2204_s7, 4  ;;  %p2154_p8 = scmp.ne.s32.totalorder %s2359_s1, %s2153_s11  ;;  %s20_s8 = int_to_ptr.vmem [resolvable:$true] %s19_s8 }
  0x14   :  { %p2157_p9 = scmp.lt.u32.totalorder %s2153_s11, %s2359_s1 }
  0x16   :  { %p2159_p10 = pnand %p2157_p9, %p2154_p8 }
  0x18   :  { %2162 = shalt.err (!%p2159_p10)
}
  0x19   :  { %s2163_s16 = scalar_lea.vmem %s20_s8, 3072  ;;  %p2168_p12 = scmp.lt.s32.totalorder %s20_s8, %s20_s8 }
  0x1a   :  { %p2164_p11 = scmp.ne.s32.totalorder %s20_s8, %s2163_s16  ;;  %p2169_p13 = scmp.lt.s32.totalorder %s2163_s16, %s2163_s16 }
  0x1c   :  { %p2170_p0 = por %p2169_p13, %p2168_p12 }
  0x1e   :  { %p2171_p1 = pnand %p2170_p0, %p2164_p11 }
  0x20   :  { %2174 = shalt.err (!%p2171_p1)
}
  0x21   :  { %s2205_s2 = smov 64   ;;  %s2206_s17 = smov 4  }
  0x22   :  { %25 = dma.hbm_to_vmem [thread:$0]  %s2359_s1, 3072, %s20_s8, [#allocation4], %s2205_s2, %s2205_s2, %s2206_s17  }
  0x23   :  { %s2207_s20 = smov [#allocation7]   ;;  %s2175_s24 = scalar_lea.hbm %s2361_s3, 8192 }
  0x24   :  { %s43_s21 = sshll.u32 %s2207_s20, 4  ;;  %p2176_p2 = scmp.ne.s32.totalorder %s2361_s3, %s2175_s24  ;;  %s44_s21 = int_to_ptr.vmem [resolvable:$true] %s43_s21 }
  0x25   :  { %p2179_p3 = scmp.lt.u32.totalorder %s2175_s24, %s2361_s3 }
  0x27   :  { %p2181_p4 = pnand %p2179_p3, %p2176_p2 }
  0x29   :  { %2184 = shalt.err (!%p2181_p4)
}
  0x2a   :  { %s2185_s29 = scalar_lea.vmem %s44_s21, 8192  ;;  %p2190_p6 = scmp.lt.s32.totalorder %s44_s21, %s44_s21 }
  0x2b   :  { %p2186_p5 = scmp.ne.s32.totalorder %s44_s21, %s2185_s29  ;;  %p2191_p7 = scmp.lt.s32.totalorder %s2185_s29, %s2185_s29 }
  0x2d   :  { %p2192_p8 = por %p2191_p7, %p2190_p6 }
  0x2f   :  { %p2193_p9 = pnand %p2192_p8, %p2186_p5 }
  0x31   :  { %2196 = shalt.err (!%p2193_p9)
}
  0x32   :  { %49 = dma.hbm_to_vmem [thread:$0]  %s2361_s3, 8192, %s44_s21, [#allocation6], %s2205_s2, %s2205_s2, %s2206_s17  }
  0x33   :  { %2197 = dma.done.wait [#allocation4], 3072  }
  0x34   :  { %2198 = vsyncadd [#allocation4], 4294964224 }
  0x35   :  { %2199 = dma.done.wait [#allocation6], 16384  }
  0x36   :  { %2200 = vsyncadd [#allocation6], 4294950912  ;;  %v2208_v0 = vmov 0.0   ;;  %vm2209_vm0 = vmmov 0   ;;  %v2039_v1 = vld [vmem:[#allocation3] sm:$0xff]   ;;  %v2040_v2 = vld [vmem:[#allocation3 + $0x8] sm:$0xff]  }
  0x37   :  { %1969 = vmatprep.subr.bf16.mxu0 %v2208_v0  ;;  %62 = vst [vmem:[#allocation2] sm:$0xff] %v2208_v0  ;;  %1985 = vmatprep.mubr.msk.bf16.mxu0 %vm2209_vm0, %v2208_v0  ;;  %v2041_v3 = vld [vmem:[#allocation3 + $0x10] sm:$0xff]   ;;  %vm65_vm1 = vcmask 155648   ;;  %v1698_v4 = vld [vmem:[%s2358_s0 + $0x24] sm:$0x1]  ;;  %v2047_v5 = vld [vmem:[#allocation3 + $0x40] sm:$0xff]  }
  0x38   :  { %1989 = vmatprep.subr.bf16.mxu1 %v2208_v0  ;;  %2005 = vmatprep.mubr.msk.bf16.mxu1 %vm2209_vm0, %v2208_v0  ;;  %66 = vst.msk [vmem:[#allocation2] sm:$0x1] %vm65_vm1, %v1698_v4  ;;  %v2042_v6 = vld [vmem:[#allocation3 + $0x18] sm:$0xff]   ;;  %v2048_v7 = vld [vmem:[#allocation3 + $0x48] sm:$0xff]   ;;  %v2043_v8 = vld [vmem:[#allocation3 + $0x20] sm:$0xff]  }
  0x39   :  { %1970 = vmatpush3.bf16.msra.mxu0 %v2039_v1  ;;  %1990 = vmatpush3.bf16.msra.mxu1 %v2047_v5  ;;  %v2049_v9 = vld [vmem:[#allocation3 + $0x50] sm:$0xff]   ;;  %v2044_v10 = vld [vmem:[#allocation3 + $0x28] sm:$0xff]   ;;  %v2050_v11 = vld [vmem:[#allocation3 + $0x58] sm:$0xff]  }
  0x3a   :  { %1971 = vmatprep.subr.bf16.mxu0 %v2208_v0  ;;  %1991 = vmatprep.subr.bf16.mxu1 %v2208_v0  ;;  %v2045_v12 = vld [vmem:[#allocation3 + $0x30] sm:$0xff]   ;;  %v2051_v13 = vld [vmem:[#allocation3 + $0x60] sm:$0xff]   ;;  %v2046_v14 = vld [vmem:[#allocation3 + $0x38] sm:$0xff]  }
  0x3b   :  { %v2052_v16 = vld [vmem:[#allocation3 + $0x68] sm:$0xff]   ;;  %v2053_v18 = vld [vmem:[#allocation3 + $0x70] sm:$0xff]   ;;  %v2054_v19 = vld [vmem:[#allocation3 + $0x78] sm:$0xff]  }
  0x3c   :  { %v2055_v20 = vld [vmem:[#allocation3 + $0x80] sm:$0xff]   ;;  %v2056_v21 = vld [vmem:[#allocation3 + $0x88] sm:$0xff]   ;;  %v2057_v22 = vld [vmem:[#allocation3 + $0x90] sm:$0xff]  }
  0x3d   :  { %1972 = vmatpush3.bf16.msra.mxu0 %v2040_v2  ;;  %1992 = vmatpush3.bf16.msra.mxu1 %v2048_v7  ;;  %v2058_v23 = vld [vmem:[#allocation3 + $0x98] sm:$0xff]   ;;  %v2059_v24 = vld [vmem:[#allocation3 + $0xa0] sm:$0xff]   ;;  %v2060_v25 = vld [vmem:[#allocation3 + $0xa8] sm:$0xff]  }
  0x3e   :  { %1973 = vmatprep.subr.bf16.mxu0 %v2208_v0  ;;  %1993 = vmatprep.subr.bf16.mxu1 %v2208_v0  ;;  %v85_v26 = vld [vmem:[%s2362_s4] ss:$0 sm:$0xff]  ;;  %v2061_v35 = vld [vmem:[#allocation3 + $0xb0] sm:$0xff]   ;;  %v395_v37 = vld [vmem:[#allocation5] sm:$0xff] }
  0x3f   :  { %v67_v15 = vld [vmem:[#allocation2] sm:$0xff]  ;;  %v399_v38 = vld [vmem:[#allocation5 + $0x20] sm:$0xff]  ;;  %v396_v39 = vld [vmem:[#allocation5 + $0x8] sm:$0xff] }
  0x40   :  { %v68_v17 = vpack.c.bf16 %v67_v15, %v67_v15  ;;  %v2062_v36 = vld [vmem:[#allocation3 + $0xb8] sm:$0xff]   ;;  %v1725_v40 = vcombine.low %v395_v37, %v399_v38  ;;  %v1726_v41 = vcombine.high %v395_v37, %v399_v38  ;;  %v400_v42 = vld [vmem:[#allocation5 + $0x28] sm:$0xff]  ;;  %v403_v43 = vld [vmem:[#allocation5 + $0x40] sm:$0xff] }
  0x41   :  { %1974 = vmatpush3.bf16.msra.mxu0 %v2041_v3  ;;  %1994 = vmatpush3.bf16.msra.mxu1 %v2049_v9  ;;  %v407_v44 = vld [vmem:[#allocation5 + $0x60] sm:$0xff]  ;;  %v1727_v45 = vcombine.low %v396_v39, %v400_v42  ;;  %v1728_v46 = vcombine.high %v396_v39, %v400_v42  ;;  %v194_v1 = vld [vmem:[%s2362_s4 + $0x1] ss:$0 sm:$0xff]  ;;  %v408_v9 = vld [vmem:[#allocation5 + $0x68] sm:$0xff] }
  0x42   :  { %1975 = vmatprep.subr.bf16.mxu0 %v2208_v0  ;;  %1995 = vmatprep.subr.bf16.mxu1 %v2208_v0  ;;  %v1734_v47 = vcombine.high %v403_v43, %v407_v44  ;;  %v1733_v48 = vcombine.low %v403_v43, %v407_v44  ;;  %v411_v49 = vld [vmem:[#allocation5 + $0x80] sm:$0xff]  ;;  %v456_v42 = vld [vmem:[#allocation5 + $0x1e8] sm:$0xff] }
  0x43   :  { %v415_v50 = vld [vmem:[#allocation5 + $0xa0] sm:$0xff] }
  0x44   :  { %v1742_v51 = vcombine.high %v411_v49, %v415_v50  ;;  %v1741_v52 = vcombine.low %v411_v49, %v415_v50  ;;  %v419_v53 = vld [vmem:[#allocation5 + $0xc0] sm:$0xff]  ;;  %v402_v50 = vld [vmem:[#allocation5 + $0x38] sm:$0xff] }
  0x45   :  { %1976 = vmatpush3.bf16.msra.mxu0 %v2042_v6  ;;  %1996 = vmatpush3.bf16.msra.mxu1 %v2050_v11  ;;  %v423_v54 = vld [vmem:[#allocation5 + $0xe0] sm:$0xff] }
  0x46   :  { %1977 = vmatprep.subr.bf16.mxu0 %v2208_v0  ;;  %1997 = vmatprep.subr.bf16.mxu1 %v2208_v0  ;;  %v1750_v55 = vcombine.high %v419_v53, %v423_v54  ;;  %v1749_v56 = vcombine.low %v419_v53, %v423_v54  ;;  %v427_v57 = vld [vmem:[#allocation5 + $0x100] sm:$0xff]  ;;  %v2210_v54 = vmov 0  }
  0x47   :  { %v431_v58 = vld [vmem:[#allocation5 + $0x120] sm:$0xff] }
  0x48   :  { %v1758_v59 = vcombine.high %v427_v57, %v431_v58  ;;  %v1757_v60 = vcombine.low %v427_v57, %v431_v58  ;;  %v435_v61 = vld [vmem:[#allocation5 + $0x140] sm:$0xff] }
  0x49   :  { %1978 = vmatpush3.bf16.msra.mxu0 %v2043_v8  ;;  %1998 = vmatpush3.bf16.msra.mxu1 %v2051_v13  ;;  %v439_v62 = vld [vmem:[#allocation5 + $0x160] sm:$0xff]  ;;  %v404_v8 = vld [vmem:[#allocation5 + $0x48] sm:$0xff] }
  0x4a   :  { %1979 = vmatprep.subr.bf16.mxu0 %v2208_v0  ;;  %1999 = vmatprep.subr.bf16.mxu1 %v2208_v0  ;;  %v1766_v63 = vcombine.high %v435_v61, %v439_v62  ;;  %v412_v13 = vld [vmem:[#allocation5 + $0x88] sm:$0xff]  ;;  %v1735_v15 = vcombine.low %v404_v8, %v408_v9  ;;  %v451_v38 = vld [vmem:[#allocation5 + $0x1c0] sm:$0xff] }
  0x4b   :  { %v455_v39 = vld [vmem:[#allocation5 + $0x1e0] sm:$0xff] }
  0x4c   :  { %v1781_v43 = vcombine.low %v451_v38, %v455_v39 }
  0x4d   :  { %1980 = vmatpush3.bf16.msra.mxu0 %v2044_v10  ;;  %2000 = vmatpush3.bf16.msra.mxu1 %v2052_v16 }
  0x4e   :  { %1981 = vmatprep.subr.bf16.mxu0 %v2208_v0  ;;  %2001 = vmatprep.subr.bf16.mxu1 %v2208_v0 }
  0x51   :  { %1982 = vmatpush3.bf16.msra.mxu0 %v2045_v12  ;;  %2002 = vmatpush3.bf16.msra.mxu1 %v2053_v18  ;;  %v1736_v12 = vcombine.high %v404_v8, %v408_v9  ;;  %v424_v18 = vld [vmem:[#allocation5 + $0xe8] sm:$0xff]  ;;  %v414_v8 = vld [vmem:[#allocation5 + $0x98] sm:$0xff] }
  0x52   :  { %1983 = vmatprep.subr.bf16.mxu0 %v2208_v0  ;;  %2003 = vmatprep.subr.bf16.mxu1 %v2208_v0  ;;  %v418_v9 = vld [vmem:[#allocation5 + $0xb8] sm:$0xff] }
  0x55   :  { %1984 = vmatpush3.bf16.msra.mxu0 %v2046_v14  ;;  %2004 = vmatpush3.bf16.msra.mxu1 %v2054_v19  ;;  %v416_v14 = vld [vmem:[#allocation5 + $0xa8] sm:$0xff] }
  0x56   :  { %2009 = vmatprep.subr.bf16.mxu0 %v2208_v0  ;;  %824 = vmatprep.subr.bf16.mxu1 %v1726_v41  ;;  %v1744_v16 = vcombine.high %v412_v13, %v416_v14  ;;  %v1743_v19 = vcombine.low %v412_v13, %v416_v14  ;;  %v1782_v41 = vcombine.high %v451_v38, %v455_v39  ;;  %v421_v14 = vld [vmem:[#allocation5 + $0xd0] sm:$0xff] }
  0x57   :  { %v1748_v13 = vcombine.high %v414_v8, %v418_v9  ;;  %v445_v38 = vld [vmem:[#allocation5 + $0x190] sm:$0xff] }
  0x58   :  { %1986 = vmatmul.mubr.bf16.vlgmr.msra.gmra.mrb[0].mxu0 %v68_v17  ;;  %v420_v17 = vld [vmem:[#allocation5 + $0xc8] sm:$0xff]  ;;  %v449_v39 = vld [vmem:[#allocation5 + $0x1b0] sm:$0xff] }
  0x59   :  { %2025 = vmatprep.mubr.msk.bf16.mxu0 %vm2209_vm0, %v2208_v0  ;;  %2010 = vmatpush3.bf16.msra.mxu0 %v2055_v20  ;;  %v1752_v20 = vcombine.high %v420_v17, %v424_v18 }
  0x5a   :  { %2011 = vmatprep.subr.bf16.mxu0 %v2208_v0 }
  0x5d   :  { %2012 = vmatpush3.bf16.msra.mxu0 %v2056_v21  ;;  %v428_v21 = vld [vmem:[#allocation5 + $0x108] sm:$0xff] }
  0x5e   :  { %2013 = vmatprep.subr.bf16.mxu0 %v2208_v0 }
  0x61   :  { %2014 = vmatpush3.bf16.msra.mxu0 %v2057_v22  ;;  %v432_v22 = vld [vmem:[#allocation5 + $0x128] sm:$0xff] }
  0x62   :  { %2015 = vmatprep.subr.bf16.mxu0 %v2208_v0 }
  0x65   :  { %2016 = vmatpush3.bf16.msra.mxu0 %v2058_v23  ;;  %v1751_v23 = vcombine.low %v420_v17, %v424_v18  ;;  %v426_v17 = vld [vmem:[#allocation5 + $0xf8] sm:$0xff] }
  0x66   :  { %2017 = vmatprep.subr.bf16.mxu0 %v2208_v0 }
  0x69   :  { %2018 = vmatpush3.bf16.msra.mxu0 %v2059_v24  ;;  %v1760_v24 = vcombine.high %v428_v21, %v432_v22 }
  0x6a   :  { %2019 = vmatprep.subr.bf16.mxu0 %v2208_v0 }
  0x6d   :  { %2020 = vmatpush3.bf16.msra.mxu0 %v2060_v25  ;;  %v436_v25 = vld [vmem:[#allocation5 + $0x148] sm:$0xff] }
  0x6e   :  { %2021 = vmatprep.subr.bf16.mxu0 %v2208_v0 }
  0x71   :  { %2022 = vmatpush3.bf16.msra.mxu0 %v2061_v35 }
  0x72   :  { %2023 = vmatprep.subr.bf16.mxu0 %v2208_v0  ;;  %v1765_v0 = vcombine.low %v435_v61, %v439_v62  ;;  %v405_v62 = vld [vmem:[#allocation5 + $0x50] sm:$0xff] }
  0x75   :  { %2024 = vmatpush3.bf16.msra.mxu0 %v2062_v36 }
  0x76   :  { %865 = vmatprep.subr.bf16.mxu0 %v1728_v46  ;;  %v397_v46 = vld [vmem:[#allocation5 + $0x10] sm:$0xff] }
 0x12b   :  { %v168_v27 = vpop.f32.mrb[0].mxu0 }
 0x12c   :  { %v169_v28 = vadd.f32 %v168_v27, %v85_v26  ;;  %v1987_v29 = vpop.f32.mrb[1].mxu0  ;;  %v440_v26 = vld [vmem:[#allocation5 + $0x168] sm:$0xff]  ;;  %v1759_v27 = vcombine.low %v428_v21, %v432_v22  ;;  %v429_v22 = vld [vmem:[#allocation5 + $0x110] sm:$0xff] }
 0x12d   :  { %v171_v30 = vpop.f32.mrb[2].mxu0  ;;  %v1767_v29 = vcombine.low %v436_v25, %v440_v26 }
 0x12e   :  { %v174_v31 = vmul.f32 0.01, %v169_v28  ;;  %v1988_v32 = vpop.f32.mrb[3].mxu0  ;;  %v443_v30 = vld [vmem:[#allocation5 + $0x180] sm:$0xff] }
 0x12f   :  { %v444_v32 = vld [vmem:[#allocation5 + $0x188] sm:$0xff] }
 0x130   :  { %v175_v33 = vmax.f32 %v169_v28, %v174_v31  ;;  %v1768_v28 = vcombine.high %v436_v25, %v440_v26  ;;  %v447_v31 = vld [vmem:[#allocation5 + $0x1a0] sm:$0xff]  ;;  %v434_v25 = vld [vmem:[#allocation5 + $0x138] sm:$0xff] }
 0x131   :  { %v1773_v35 = vcombine.low %v443_v30, %v447_v31 }
 0x132   :  { %v176_v34 = vpack.c.bf16 %v175_v33, %v175_v33  ;;  %v1774_v33 = vcombine.high %v443_v30, %v447_v31  ;;  %v437_v30 = vld [vmem:[#allocation5 + $0x150] sm:$0xff] }
 0x133   :  { %v441_v31 = vld [vmem:[#allocation5 + $0x170] sm:$0xff] }
 0x134   :  { %2006 = vmatmul.mubr.bf16.vlgmr.msra.gmra.mrb[0].mxu1 %v176_v34  ;;  %v448_v34 = vld [vmem:[#allocation5 + $0x1a8] sm:$0xff] }
 0x135   :  { %825 = vmatpush1.bf16.msra.mxu1 %v1725_v40  ;;  %v1775_v36 = vcombine.low %v444_v32, %v448_v34  ;;  %v1776_v37 = vcombine.high %v444_v32, %v448_v34  ;;  %v452_v40 = vld [vmem:[#allocation5 + $0x1c8] sm:$0xff]  ;;  %856 = vmatprep.mubr.bf16.mxu1 %v2210_v54  ;;  %v438_v32 = vld [vmem:[#allocation5 + $0x158] sm:$0xff] }
 0x136   :  { %826 = vmatprep.subr.bf16.mxu1 %v1734_v47  ;;  %v1783_v44 = vcombine.low %v452_v40, %v456_v42  ;;  %v401_v47 = vld [vmem:[#allocation5 + $0x30] sm:$0xff] }
 0x137   :  { %v1730_v49 = vcombine.high %v397_v46, %v401_v47 }
 0x139   :  { %827 = vmatpush1.bf16.msra.mxu1 %v1733_v48  ;;  %v398_v48 = vld [vmem:[#allocation5 + $0x18] sm:$0xff] }
 0x13a   :  { %828 = vmatprep.subr.bf16.mxu1 %v1742_v51  ;;  %v1729_v51 = vcombine.low %v397_v46, %v401_v47  ;;  %v1732_v53 = vcombine.high %v398_v48, %v402_v50  ;;  %v453_v46 = vld [vmem:[#allocation5 + $0x1d0] sm:$0xff] }
 0x13b   :  { %v457_v47 = vld [vmem:[#allocation5 + $0x1f0] sm:$0xff] }
 0x13d   :  { %829 = vmatpush1.bf16.msra.mxu1 %v1741_v52  ;;  %v1731_v52 = vcombine.low %v398_v48, %v402_v50  ;;  %v454_v48 = vld [vmem:[#allocation5 + $0x1d8] sm:$0xff]  ;;  %v1777_v50 = vcombine.low %v445_v38, %v449_v39 }
 0x13e   :  { %830 = vmatprep.subr.bf16.mxu1 %v1750_v55  ;;  %v303_v55 = vld [vmem:[%s2362_s4 + $0x2] ss:$0 sm:$0xff] }
 0x141   :  { %831 = vmatpush1.bf16.msra.mxu1 %v1749_v56 }
 0x142   :  { %832 = vmatprep.subr.bf16.mxu1 %v1758_v59 }
 0x145   :  { %833 = vmatpush1.bf16.msra.mxu1 %v1757_v60 }
 0x146   :  { %834 = vmatprep.subr.bf16.mxu1 %v1766_v63  ;;  %v409_v63 = vld [vmem:[#allocation5 + $0x70] sm:$0xff] }
 0x149   :  { %835 = vmatpush1.bf16.msra.mxu1 %v1765_v0  ;;  %v406_v0 = vld [vmem:[#allocation5 + $0x58] sm:$0xff] }
 0x14a   :  { %836 = vmatprep.subr.bf16.mxu1 %v1774_v33  ;;  %v442_v33 = vld [vmem:[#allocation5 + $0x178] sm:$0xff] }
 0x14d   :  { %837 = vmatpush1.bf16.msra.mxu1 %v1773_v35 }
 0x14e   :  { %838 = vmatprep.subr.bf16.mxu1 %v1782_v41  ;;  %v450_v41 = vld [vmem:[#allocation5 + $0x1b8] sm:$0xff] }
 0x151   :  { %839 = vmatpush1.bf16.msra.mxu1 %v1781_v43  ;;  %v1771_v43 = vcombine.low %v438_v32, %v442_v33 }
 0x152   :  { %906 = vmatprep.subr.bf16.mxu1 %v1730_v49  ;;  %v458_v49 = vld [vmem:[#allocation5 + $0x1f8] sm:$0xff] }
 0x207   :  { %v277_v2 = vpop.f32.mrb[0].mxu1 }
 0x208   :  { %v278_v3 = vadd.f32 %v277_v2, %v194_v1  ;;  %v2007_v4 = vpop.f32.mrb[1].mxu1  ;;  %v410_v1 = vld [vmem:[#allocation5 + $0x78] sm:$0xff] }
 0x209   :  { %v280_v5 = vpop.f32.mrb[2].mxu1  ;;  %v1738_v4 = vcombine.high %v405_v62, %v409_v63 }
 0x20a   :  { %v283_v6 = vmul.f32 0.01, %v278_v3  ;;  %v2008_v7 = vpop.f32.mrb[3].mxu1  ;;  %v1740_v5 = vcombine.high %v406_v0, %v410_v1 }
 0x20b   :  { %v417_v7 = vld [vmem:[#allocation5 + $0xb0] sm:$0xff] }
 0x20c   :  { %v284_v10 = vmax.f32 %v278_v3, %v283_v6  ;;  %v413_v6 = vld [vmem:[#allocation5 + $0x90] sm:$0xff] }
 0x20d   :  { %v1745_v18 = vcombine.low %v413_v6, %v417_v7 }
 0x20e   :  { %v285_v11 = vpack.c.bf16 %v284_v10, %v284_v10  ;;  %v1737_v10 = vcombine.low %v405_v62, %v409_v63  ;;  %v2069_v62 = vld [vmem:[#allocation7 + $0x8] sm:$0xff]  }
 0x20f   :  { %v2070_v63 = vld [vmem:[#allocation7 + $0x88] sm:$0xff]  }
 0x210   :  { %2026 = vmatmul.mubr.bf16.vlgmr.msra.gmra.mrb[4].mxu0 %v285_v11  ;;  %v1739_v11 = vcombine.low %v406_v0, %v410_v1  ;;  %v2071_v0 = vld [vmem:[#allocation7 + $0x50] sm:$0xff]  }
 0x211   :  { %866 = vmatpush1.bf16.msra.mxu0 %v1727_v45  ;;  %v1784_v45 = vcombine.high %v452_v40, %v456_v42  ;;  %897 = vmatprep.mubr.bf16.mxu0 %v2210_v54  ;;  %v446_v40 = vld [vmem:[#allocation5 + $0x198] sm:$0xff]  ;;  %v1769_v42 = vcombine.low %v437_v30, %v441_v31  ;;  %v2072_v1 = vld [vmem:[#allocation7 + $0xd0] sm:$0xff]  }
 0x212   :  { %867 = vmatprep.subr.bf16.mxu0 %v1736_v12  ;;  %v1746_v12 = vcombine.high %v413_v6, %v417_v7  ;;  %v2076_v6 = vld [vmem:[#allocation7 + $0xd8] sm:$0xff]  }
 0x213   :  { %v2077_v7 = vld [vmem:[#allocation7 + $0x18] sm:$0xff]  }
 0x215   :  { %868 = vmatpush1.bf16.msra.mxu0 %v1735_v15  ;;  %v425_v15 = vld [vmem:[#allocation5 + $0xf0] sm:$0xff] }
 0x216   :  { %869 = vmatprep.subr.bf16.mxu0 %v1744_v16  ;;  %v422_v16 = vld [vmem:[#allocation5 + $0xd8] sm:$0xff]  ;;  %v1753_v26 = vcombine.low %v421_v14, %v425_v15 }
 0x217   :  { %v1756_v21 = vcombine.high %v422_v16, %v426_v17 }
 0x219   :  { %870 = vmatpush1.bf16.msra.mxu0 %v1743_v19  ;;  %v1747_v19 = vcombine.low %v414_v8, %v418_v9  ;;  %v2079_v8 = vld [vmem:[#allocation7 + $0x60] sm:$0xff]  }
 0x21a   :  { %871 = vmatprep.subr.bf16.mxu0 %v1752_v20  ;;  %v1754_v20 = vcombine.high %v421_v14, %v425_v15  ;;  %v2080_v9 = vld [vmem:[#allocation7 + $0xe0] sm:$0xff]   ;;  %v2085_v14 = vld [vmem:[#allocation7 + $0x28] sm:$0xff]  }
 0x21b   :  { %v2086_v15 = vld [vmem:[#allocation7 + $0xa8] sm:$0xff]  }
 0x21d   :  { %872 = vmatpush1.bf16.msra.mxu0 %v1751_v23  ;;  %v433_v23 = vld [vmem:[#allocation5 + $0x130] sm:$0xff] }
 0x21e   :  { %873 = vmatprep.subr.bf16.mxu0 %v1760_v24  ;;  %v430_v24 = vld [vmem:[#allocation5 + $0x118] sm:$0xff]  ;;  %v1761_v34 = vcombine.low %v429_v22, %v433_v23 }
 0x21f   :  { %v1763_v35 = vcombine.low %v430_v24, %v434_v25 }
 0x221   :  { %874 = vmatpush1.bf16.msra.mxu0 %v1759_v27  ;;  %v1755_v27 = vcombine.low %v422_v16, %v426_v17  ;;  %v2087_v16 = vld [vmem:[#allocation7 + $0x70] sm:$0xff]  }
 0x222   :  { %875 = vmatprep.subr.bf16.mxu0 %v1768_v28  ;;  %v1762_v28 = vcombine.high %v429_v22, %v433_v23  ;;  %v2088_v17 = vld [vmem:[#allocation7 + $0xf0] sm:$0xff]   ;;  %v2093_v22 = vld [vmem:[#allocation7 + $0x38] sm:$0xff]  }
 0x223   :  { %v2094_v23 = vld [vmem:[#allocation7 + $0xb8] sm:$0xff]  }
 0x225   :  { %876 = vmatpush1.bf16.msra.mxu0 %v1767_v29  ;;  %v1764_v29 = vcombine.high %v430_v24, %v434_v25  ;;  %v2095_v24 = vld [vmem:[#allocation7 + $0x140] sm:$0xff]  }
 0x226   :  { %877 = vmatprep.subr.bf16.mxu0 %v1776_v37  ;;  %v1772_v37 = vcombine.high %v438_v32, %v442_v33  ;;  %v2096_v25 = vld [vmem:[#allocation7 + $0x1c0] sm:$0xff]  }
 0x229   :  { %878 = vmatpush1.bf16.msra.mxu0 %v1775_v36  ;;  %v1770_v36 = vcombine.high %v437_v30, %v441_v31 }
 0x22a   :  { %879 = vmatprep.subr.bf16.mxu0 %v1784_v45  ;;  %v1780_v45 = vcombine.high %v446_v40, %v450_v41 }
 0x22d   :  { %880 = vmatpush1.bf16.msra.mxu0 %v1783_v44  ;;  %v1778_v44 = vcombine.high %v445_v38, %v449_v39 }
 0x22e   :  { %947 = vmatprep.subr.bf16.mxu0 %v1732_v53  ;;  %v1788_v53 = vcombine.high %v454_v48, %v458_v49 }
 0x2e3   :  { %v386_v56 = vpop.f32.mrb[4].mxu0 }
 0x2e4   :  { %v387_v57 = vadd.f32 %v386_v56, %v303_v55  ;;  %v2027_v58 = vpop.f32.mrb[5].mxu0  ;;  %v1787_v55 = vcombine.low %v454_v48, %v458_v49  ;;  %v2063_v56 = vld [vmem:[#allocation7 + $0x40] sm:$0xff]  }
 0x2e5   :  { %v389_v59 = vpop.f32.mrb[6].mxu0  ;;  %v2065_v58 = vld [vmem:[#allocation7] sm:$0xff]  }
 0x2e6   :  { %v392_v60 = vmul.f32 0.01, %v387_v57  ;;  %v2028_v61 = vpop.f32.mrb[7].mxu0  ;;  %v2066_v59 = vld [vmem:[#allocation7 + $0x80] sm:$0xff]  }
 0x2e7   :  { %v2068_v61 = vld [vmem:[#allocation7 + $0xc8] sm:$0xff]  }
 0x2e8   :  { %v393_v2 = vmax.f32 %v387_v57, %v392_v60  ;;  %v2064_v57 = vld [vmem:[#allocation7 + $0xc0] sm:$0xff]   ;;  %v2067_v60 = vld [vmem:[#allocation7 + $0x48] sm:$0xff]  }
 0x2ea   :  { %v2320_v3 = vpack.c.bf16 %v393_v2, %v393_v2  ;;  %v2073_v2 = vld [vmem:[#allocation7 + $0x10] sm:$0xff]  }
 0x2ec   :  { %857 = vmatmul.mubr.bf16.vlgmr.msra.gmra.mrb[4].mxu1 %v2320_v3  ;;  %898 = vmatmul.mubr.bf16.vlgmr.msra.gmra.mrb[8].mxu0 %v2320_v3 }
 0x2ed   :  { %907 = vmatpush1.bf16.msra.mxu1 %v1729_v51  ;;  %948 = vmatpush1.bf16.msra.mxu0 %v1731_v52  ;;  %v1779_v51 = vcombine.low %v446_v40, %v450_v41  ;;  %v1786_v52 = vcombine.high %v453_v46, %v457_v47 }
 0x2ee   :  { %908 = vmatprep.subr.bf16.mxu1 %v1738_v4  ;;  %949 = vmatprep.subr.bf16.mxu0 %v1740_v5  ;;  %v2074_v4 = vld [vmem:[#allocation7 + $0x90] sm:$0xff]   ;;  %v2075_v5 = vld [vmem:[#allocation7 + $0x58] sm:$0xff]  }
 0x2ef   :  { %938 = vmatprep.mubr.bf16.mxu1 %v2210_v54  ;;  %979 = vmatprep.mubr.bf16.mxu0 %v2210_v54  ;;  %v1785_v54 = vcombine.low %v453_v46, %v457_v47 }
 0x2f1   :  { %909 = vmatpush1.bf16.msra.mxu1 %v1737_v10  ;;  %950 = vmatpush1.bf16.msra.mxu0 %v1739_v11  ;;  %v2081_v10 = vld [vmem:[#allocation7 + $0x20] sm:$0xff]  }
 0x2f2   :  { %910 = vmatprep.subr.bf16.mxu1 %v1746_v12  ;;  %951 = vmatprep.subr.bf16.mxu0 %v1748_v13  ;;  %v2082_v11 = vld [vmem:[#allocation7 + $0xa0] sm:$0xff]   ;;  %v2083_v12 = vld [vmem:[#allocation7 + $0x68] sm:$0xff]  }
 0x2f3   :  { %v2084_v13 = vld [vmem:[#allocation7 + $0xe8] sm:$0xff]  }
 0x2f5   :  { %911 = vmatpush1.bf16.msra.mxu1 %v1745_v18  ;;  %952 = vmatpush1.bf16.msra.mxu0 %v1747_v19  ;;  %v2089_v18 = vld [vmem:[#allocation7 + $0x30] sm:$0xff]  }
 0x2f6   :  { %912 = vmatprep.subr.bf16.mxu1 %v1754_v20  ;;  %953 = vmatprep.subr.bf16.mxu0 %v1756_v21  ;;  %v2090_v19 = vld [vmem:[#allocation7 + $0xb0] sm:$0xff]   ;;  %v2091_v20 = vld [vmem:[#allocation7 + $0x78] sm:$0xff]  }
 0x2f7   :  { %v2092_v21 = vld [vmem:[#allocation7 + $0xf8] sm:$0xff]  }
 0x2f9   :  { %913 = vmatpush1.bf16.msra.mxu1 %v1753_v26  ;;  %954 = vmatpush1.bf16.msra.mxu0 %v1755_v27  ;;  %v464_v26 = vlaneseq }
 0x2fa   :  { %914 = vmatprep.subr.bf16.mxu1 %v1762_v28  ;;  %955 = vmatprep.subr.bf16.mxu0 %v1764_v29  ;;  %v1723_v28 = vld [vmem:[%s2362_s4 + $0x3] ss:$8 sm:$0xf] }
 0x2fb   :  { %v2326_v27 = vshrl.u32 %v464_v26, 7  ;;  %v1724_v29 = vld [vmem:[%s2362_s4 + $0x3] ss:$8 sm:$0xf0] }
 0x2fc   :  { %v2334_v30 = vor.u32 %v1724_v29, %v1723_v28  ;;  %v2119_v28 = vld [vmem:[#allocation7 + $0x170] sm:$0xff]  }
 0x2fd   :  { %915 = vmatpush1.bf16.msra.mxu1 %v1761_v34  ;;  %956 = vmatpush1.bf16.msra.mxu0 %v1763_v35  ;;  %v466_v31 = vsub.s32 0, %v2326_v27  ;;  %v474_v32 = vsub.s32 2, %v2326_v27  ;;  %v470_v33 = vsub.s32 1, %v2326_v27  ;;  %v478_v34 = vsub.s32 3, %v2326_v27  ;;  %v2120_v29 = vld [vmem:[#allocation7 + $0x1f0] sm:$0xff]  }
 0x2fe   :  { %916 = vmatprep.subr.bf16.mxu1 %v1770_v36  ;;  %957 = vmatprep.subr.bf16.mxu0 %v1772_v37 }
 0x2ff   :  { %v467_v35 = vrot.slane %v2334_v30, %v466_v31  ;;  %v475_v36 = vrot.slane %v2334_v30, %v474_v32  ;;  %v471_v37 = vrot.slane %v2334_v30, %v470_v33  ;;  %v479_v38 = vrot.slane %v2334_v30, %v478_v34 }
 0x301   :  { %917 = vmatpush1.bf16.msra.mxu1 %v1769_v42  ;;  %958 = vmatpush1.bf16.msra.mxu0 %v1771_v43 }
 0x302   :  { %918 = vmatprep.subr.bf16.mxu1 %v1778_v44  ;;  %959 = vmatprep.subr.bf16.mxu0 %v1780_v45 }
 0x305   :  { %919 = vmatpush1.bf16.msra.mxu1 %v1777_v50  ;;  %960 = vmatpush1.bf16.msra.mxu0 %v1779_v51 }
 0x306   :  { %920 = vmatprep.subr.bf16.mxu1 %v1786_v52  ;;  %961 = vmatprep.subr.bf16.mxu0 %v1788_v53 }
 0x309   :  { %921 = vmatpush1.bf16.msra.mxu1 %v1785_v54  ;;  %962 = vmatpush1.bf16.msra.mxu0 %v1787_v55 }
 0x30a   :  { %1881 = vmatprep.subr.bf16.mxu1 %v2063_v56  ;;  %1903 = vmatprep.subr.bf16.mxu0 %v2064_v57 }
 0x30c   :  { %939 = vmatmul.mubr.bf16.vlgmr.msra.gmra.mrb[8].mxu1 %v2320_v3  ;;  %980 = vmatmul.mubr.bf16.vlgmr.msra.gmra.mrb[12].mxu0 %v2320_v3  ;;  %v2078_v3 = vld [vmem:[#allocation7 + $0x98] sm:$0xff]  }
 0x30d   :  { %1882 = vmatpush3.bf16.msra.mxu1 %v2065_v58  ;;  %1904 = vmatpush3.bf16.msra.mxu0 %v2066_v59 }
 0x30e   :  { %1883 = vmatprep.subr.bf16.mxu1 %v2067_v60  ;;  %1905 = vmatprep.subr.bf16.mxu0 %v2068_v61  ;;  %v2097_v61 = vld [vmem:[#allocation7 + $0x100] sm:$0xff]  }
 0x311   :  { %1884 = vmatpush3.bf16.msra.mxu1 %v2069_v62  ;;  %1906 = vmatpush3.bf16.msra.mxu0 %v2070_v63  ;;  %v2098_v62 = vld [vmem:[#allocation7 + $0x180] sm:$0xff]  }
 0x312   :  { %1885 = vmatprep.subr.bf16.mxu1 %v2071_v0  ;;  %1907 = vmatprep.subr.bf16.mxu0 %v2072_v1  ;;  %v2099_v1 = vld [vmem:[#allocation7 + $0x148] sm:$0xff]  }
 0x315   :  { %1886 = vmatpush3.bf16.msra.mxu1 %v2073_v2  ;;  %1908 = vmatpush3.bf16.msra.mxu0 %v2074_v4  ;;  %v2100_v2 = vld [vmem:[#allocation7 + $0x1c8] sm:$0xff]  }
 0x316   :  { %1887 = vmatprep.subr.bf16.mxu1 %v2075_v5  ;;  %1909 = vmatprep.subr.bf16.mxu0 %v2076_v6  ;;  %v2101_v4 = vld [vmem:[#allocation7 + $0x108] sm:$0xff]   ;;  %v2103_v6 = vld [vmem:[#allocation7 + $0x150] sm:$0xff]  }
 0x317   :  { %v2102_v5 = vld [vmem:[#allocation7 + $0x188] sm:$0xff]  }
 0x319   :  { %1888 = vmatpush3.bf16.msra.mxu1 %v2077_v7  ;;  %1910 = vmatpush3.bf16.msra.mxu0 %v2078_v3  ;;  %v2104_v7 = vld [vmem:[#allocation7 + $0x1d0] sm:$0xff]  }
 0x31a   :  { %1889 = vmatprep.subr.bf16.mxu1 %v2079_v8  ;;  %1911 = vmatprep.subr.bf16.mxu0 %v2080_v9  ;;  %v2105_v3 = vld [vmem:[#allocation7 + $0x110] sm:$0xff]   ;;  %v2107_v9 = vld [vmem:[#allocation7 + $0x158] sm:$0xff]  }
 0x31b   :  { %v2106_v8 = vld [vmem:[#allocation7 + $0x190] sm:$0xff]  }
 0x31d   :  { %1890 = vmatpush3.bf16.msra.mxu1 %v2081_v10  ;;  %1912 = vmatpush3.bf16.msra.mxu0 %v2082_v11  ;;  %v2108_v10 = vld [vmem:[#allocation7 + $0x1d8] sm:$0xff]  }
 0x31e   :  { %1891 = vmatprep.subr.bf16.mxu1 %v2083_v12  ;;  %1913 = vmatprep.subr.bf16.mxu0 %v2084_v13  ;;  %v2109_v11 = vld [vmem:[#allocation7 + $0x118] sm:$0xff]   ;;  %v2111_v13 = vld [vmem:[#allocation7 + $0x160] sm:$0xff]  }
 0x31f   :  { %v2110_v12 = vld [vmem:[#allocation7 + $0x198] sm:$0xff]  }
 0x321   :  { %1892 = vmatpush3.bf16.msra.mxu1 %v2085_v14  ;;  %1914 = vmatpush3.bf16.msra.mxu0 %v2086_v15  ;;  %v2112_v14 = vld [vmem:[#allocation7 + $0x1e0] sm:$0xff]  }
 0x322   :  { %1893 = vmatprep.subr.bf16.mxu1 %v2087_v16  ;;  %1915 = vmatprep.subr.bf16.mxu0 %v2088_v17  ;;  %v2113_v15 = vld [vmem:[#allocation7 + $0x120] sm:$0xff]   ;;  %v2115_v17 = vld [vmem:[#allocation7 + $0x168] sm:$0xff]  }
 0x323   :  { %v2114_v16 = vld [vmem:[#allocation7 + $0x1a0] sm:$0xff]  }
 0x325   :  { %1894 = vmatpush3.bf16.msra.mxu1 %v2089_v18  ;;  %1916 = vmatpush3.bf16.msra.mxu0 %v2090_v19  ;;  %v2116_v18 = vld [vmem:[#allocation7 + $0x1e8] sm:$0xff]   ;;  %v482_v19 = vsub.s32 4, %v2326_v27 }
 0x326   :  { %1895 = vmatprep.subr.bf16.mxu1 %v2091_v20  ;;  %1917 = vmatprep.subr.bf16.mxu0 %v2092_v21  ;;  %v490_v20 = vsub.s32 6, %v2326_v27  ;;  %v486_v21 = vsub.s32 5, %v2326_v27 }
 0x328   :  { %v491_v26 = vrot.slane %v2334_v30, %v490_v20  ;;  %v487_v31 = vrot.slane %v2334_v30, %v486_v21 }
 0x329   :  { %1896 = vmatpush3.bf16.msra.mxu1 %v2093_v22  ;;  %1918 = vmatpush3.bf16.msra.mxu0 %v2094_v23  ;;  %v494_v22 = vsub.s32 7, %v2326_v27  ;;  %v2117_v23 = vld [vmem:[#allocation7 + $0x128] sm:$0xff]   ;;  %v2121_v27 = vld [vmem:[#allocation7 + $0x130] sm:$0xff]  }
 0x32a   :  { %1925 = vmatprep.subr.bf16.mxu1 %v2095_v24  ;;  %1947 = vmatprep.subr.bf16.mxu0 %v2096_v25  ;;  %v2118_v24 = vld [vmem:[#allocation7 + $0x1a8] sm:$0xff]   ;;  %v483_v25 = vrot.slane %v2334_v30, %v482_v19 }
 0x32b   :  { %v495_v32 = vrot.slane %v2334_v30, %v494_v22 }
 0x3bf   :  { %v858_v39 = vpop.f32.mrb[4].mxu1  ;;  %v899_v40 = vpop.f32.mrb[8].mxu0 }
 0x3c0   :  { %v859_v41 = vadd.f32 %v858_v39, %v467_v35  ;;  %v900_v42 = vadd.f32 %v899_v40, %v475_v36  ;;  %v860_v43 = vpop.f32.mrb[5].mxu1  ;;  %v901_v44 = vpop.f32.mrb[9].mxu0  ;;  %v2122_v35 = vld [vmem:[#allocation7 + $0x1b0] sm:$0xff]   ;;  %v2123_v40 = vld [vmem:[#allocation7 + $0x178] sm:$0xff]  }
 0x3c1   :  { %v861_v45 = vadd.f32 %v860_v43, %v471_v37  ;;  %v902_v46 = vadd.f32 %v901_v44, %v479_v38  ;;  %v862_v47 = vpop.f32.mrb[6].mxu1  ;;  %v903_v48 = vpop.f32.mrb[10].mxu0 }
 0x3c2   :  { %v988_v49 = vmul.f32 0.01, %v859_v41  ;;  %v990_v50 = vmul.f32 0.01, %v900_v42  ;;  %v863_v51 = vpop.f32.mrb[7].mxu1  ;;  %v904_v52 = vpop.f32.mrb[11].mxu0 }
 0x3c3   :  { %v989_v53 = vmul.f32 0.01, %v861_v45  ;;  %v991_v54 = vmul.f32 0.01, %v902_v46  ;;  %v2125_v51 = vld [vmem:[#allocation7 + $0x138] sm:$0xff]  }
 0x3c4   :  { %v996_v55 = vmax.f32 %v859_v41, %v988_v49  ;;  %v998_v56 = vmax.f32 %v900_v42, %v990_v50  ;;  %v2124_v41 = vld [vmem:[#allocation7 + $0x1f8] sm:$0xff]  }
 0x3c5   :  { %v997_v57 = vmax.f32 %v861_v45, %v989_v53  ;;  %v999_v58 = vmax.f32 %v902_v46, %v991_v54  ;;  %v2126_v52 = vld [vmem:[#allocation7 + $0x1b8] sm:$0xff]  }
 0x3c6   :  { %v1004_v63 = vpack.c.bf16 %v996_v55, %v996_v55  ;;  %v1006_v0 = vpack.c.bf16 %v998_v56, %v998_v56 }
 0x3c7   :  { %v1005_v59 = vpack.c.bf16 %v997_v57, %v997_v57  ;;  %v1007_v60 = vpack.c.bf16 %v999_v58, %v999_v58 }
 0x3c9   :  { %1557 = vmatprep.mubr.bf16.mxu1 %v1005_v59  ;;  %1597 = vmatprep.mubr.bf16.mxu0 %v1007_v60 }
 0x3ca   :  { %1558 = vmatmul.mubr.bf16.vlgmr.msra.gmra.mrb[12].mxu1 %v1004_v63  ;;  %1598 = vmatmul.mubr.bf16.vlgmr.msra.gmra.mrb[16].mxu0 %v1006_v0  ;;  %v1140_v63 = vld [vmem:[%s2362_s4 + $0x4] ss:$0 sm:$0xff] }
 0x3cb   :  { %1926 = vmatpush3.bf16.msra.mxu1 %v2097_v61  ;;  %1948 = vmatpush3.bf16.msra.mxu0 %v2098_v62 }
 0x3cc   :  { %1927 = vmatprep.subr.bf16.mxu1 %v2099_v1  ;;  %1949 = vmatprep.subr.bf16.mxu0 %v2100_v2 }
 0x3cf   :  { %1928 = vmatpush3.bf16.msra.mxu1 %v2101_v4  ;;  %1950 = vmatpush3.bf16.msra.mxu0 %v2102_v5 }
 0x3d0   :  { %1929 = vmatprep.subr.bf16.mxu1 %v2103_v6  ;;  %1951 = vmatprep.subr.bf16.mxu0 %v2104_v7 }
 0x3d3   :  { %1930 = vmatpush3.bf16.msra.mxu1 %v2105_v3  ;;  %1952 = vmatpush3.bf16.msra.mxu0 %v2106_v8 }
 0x3d4   :  { %1931 = vmatprep.subr.bf16.mxu1 %v2107_v9  ;;  %1953 = vmatprep.subr.bf16.mxu0 %v2108_v10 }
 0x3d7   :  { %1932 = vmatpush3.bf16.msra.mxu1 %v2109_v11  ;;  %1954 = vmatpush3.bf16.msra.mxu0 %v2110_v12 }
 0x3d8   :  { %1933 = vmatprep.subr.bf16.mxu1 %v2111_v13  ;;  %1955 = vmatprep.subr.bf16.mxu0 %v2112_v14 }
 0x3db   :  { %1934 = vmatpush3.bf16.msra.mxu1 %v2113_v15  ;;  %1956 = vmatpush3.bf16.msra.mxu0 %v2114_v16 }
 0x3dc   :  { %1935 = vmatprep.subr.bf16.mxu1 %v2115_v17  ;;  %1957 = vmatprep.subr.bf16.mxu0 %v2116_v18 }
 0x3df   :  { %v940_v33 = vpop.f32.mrb[8].mxu1  ;;  %v981_v34 = vpop.f32.mrb[12].mxu0  ;;  %1936 = vmatpush3.bf16.msra.mxu1 %v2117_v23  ;;  %1958 = vmatpush3.bf16.msra.mxu0 %v2118_v24 }
 0x3e0   :  { %v941_v36 = vadd.f32 %v940_v33, %v483_v25  ;;  %v982_v37 = vadd.f32 %v981_v34, %v491_v26  ;;  %v942_v38 = vpop.f32.mrb[9].mxu1  ;;  %v983_v39 = vpop.f32.mrb[13].mxu0  ;;  %1937 = vmatprep.subr.bf16.mxu1 %v2119_v28  ;;  %1959 = vmatprep.subr.bf16.mxu0 %v2120_v29 }
 0x3e1   :  { %v943_v42 = vadd.f32 %v942_v38, %v487_v31  ;;  %v984_v43 = vadd.f32 %v983_v39, %v495_v32  ;;  %v944_v44 = vpop.f32.mrb[10].mxu1  ;;  %v985_v45 = vpop.f32.mrb[14].mxu0 }
 0x3e2   :  { %v992_v46 = vmul.f32 0.01, %v941_v36  ;;  %v994_v30 = vmul.f32 0.01, %v982_v37  ;;  %v945_v47 = vpop.f32.mrb[11].mxu1  ;;  %v986_v48 = vpop.f32.mrb[15].mxu0 }
 0x3e3   :  { %v993_v49 = vmul.f32 0.01, %v943_v42  ;;  %v995_v50 = vmul.f32 0.01, %v984_v43  ;;  %1938 = vmatpush3.bf16.msra.mxu1 %v2121_v27  ;;  %1960 = vmatpush3.bf16.msra.mxu0 %v2122_v35 }
 0x3e4   :  { %v1000_v53 = vmax.f32 %v941_v36, %v992_v46  ;;  %v1002_v54 = vmax.f32 %v982_v37, %v994_v30  ;;  %1939 = vmatprep.subr.bf16.mxu1 %v2123_v40  ;;  %1961 = vmatprep.subr.bf16.mxu0 %v2124_v41 }
 0x3e5   :  { %v1001_v55 = vmax.f32 %v943_v42, %v993_v49  ;;  %v1003_v56 = vmax.f32 %v984_v43, %v995_v50 }
 0x3e6   :  { %v1008_v59 = vpack.c.bf16 %v1000_v53, %v1000_v53  ;;  %v1010_v60 = vpack.c.bf16 %v1002_v54, %v1002_v54 }
 0x3e7   :  { %v1009_v57 = vpack.c.bf16 %v1001_v55, %v1001_v55  ;;  %v1011_v58 = vpack.c.bf16 %v1003_v56, %v1003_v56  ;;  %1940 = vmatpush3.bf16.msra.mxu1 %v2125_v51  ;;  %1962 = vmatpush3.bf16.msra.mxu0 %v2126_v52 }
 0x3e9   :  { %1637 = vmatprep.mubr.bf16.mxu1 %v1009_v57  ;;  %1677 = vmatprep.mubr.bf16.mxu0 %v1011_v58 }
 0x3ea   :  { %1638 = vmatmul.mubr.bf16.vlgmr.msra.gmra.mrb[16].mxu1 %v1008_v59  ;;  %1678 = vmatmul.mubr.bf16.vlgmr.msra.gmra.mrb[20].mxu0 %v1010_v60 }
 0x49d   :  { %v1897_v61 = vpop.f32.mrb[12].mxu1  ;;  %v1919_v62 = vpop.f32.mrb[16].mxu0 }
 0x49e   :  { %v1898_v0 = vpop.f32.mrb[13].mxu1  ;;  %v1920_v1 = vpop.f32.mrb[17].mxu0 }
 0x49f   :  { %v1899_v2 = vadd.f32 %v1898_v0, %v1897_v61  ;;  %v1921_v4 = vadd.f32 %v1920_v1, %v1919_v62  ;;  %v1900_v5 = vpop.f32.mrb[14].mxu1  ;;  %v1922_v6 = vpop.f32.mrb[18].mxu0 }
 0x4a0   :  { %v1901_v7 = vpop.f32.mrb[15].mxu1  ;;  %v1923_v3 = vpop.f32.mrb[19].mxu0 }
 0x4a1   :  { %v1560_v8 = vadd.f32 %v1899_v2, %v1140_v63 }
 0x4a3   :  { %v1600_v9 = vadd.f32 %v1921_v4, %v1560_v8 }
 0x4bd   :  { %v1941_v10 = vpop.f32.mrb[16].mxu1  ;;  %v1963_v11 = vpop.f32.mrb[20].mxu0 }
 0x4be   :  { %v1942_v12 = vpop.f32.mrb[17].mxu1  ;;  %v1964_v13 = vpop.f32.mrb[21].mxu0 }
 0x4bf   :  { %v1943_v14 = vadd.f32 %v1942_v12, %v1941_v10  ;;  %v1965_v15 = vadd.f32 %v1964_v13, %v1963_v11  ;;  %v1944_v16 = vpop.f32.mrb[18].mxu1  ;;  %v1966_v17 = vpop.f32.mrb[22].mxu0 }
 0x4c0   :  { %v1945_v18 = vpop.f32.mrb[19].mxu1  ;;  %v1967_v19 = vpop.f32.mrb[23].mxu0 }
 0x4c1   :  { %v1640_v20 = vadd.f32 %v1943_v14, %v1600_v9 }
 0x4c3   :  { %v1680_v21 = vadd.f32 %v1965_v15, %v1640_v20 }
 0x4c5   :  { %v1853_v22 = vmul.f32 -1.442695, %v1680_v21 }
 0x4c7   :  { %2127 = vpow2.f32 %v1853_v22 }
 0x4d1   :  { %v2128_v23 = vpop.eup %2127 }
 0x4d2   :  { %v1688_v24 = vadd.f32 1.0, %v2128_v23 }
 0x4d4   :  { %2129 = vrcp.f32 %v1688_v24 }
 0x4de   :  { %v2130_v25 = vpop.eup %2129 }
 0x4df   :  { %1691 = vst [vmem:[%s2363_s5] sm:$0xff] %v2130_v25 }
 0x4e0   :  { %1696 = vsyncpa [#allocation4], 1 }
 0x4e1   :  { %1697 = vsyncpa [#allocation6], 1 }

</bundles_post_ra>
